<compile_context>
chip_gen: v7x
topology: tpu7x:2x2x1
jax: 0.10.0
libtpu: 0.0.40
codegen_flags: <defaults>
</compile_context>

<pallas_src>
import jax
import jax.numpy as jnp
from jax import lax
from jax.experimental import pallas as pl
from jax.experimental.pallas import tpu as pltpu


def _round_up(x: int, m: int) -> int:
    return ((x + m - 1) // m) * m


def _choose_batch_tile(batch: int, dim: int, itemsize: int) -> int:
    """Batch tile from the lane-padded VMEM footprint of one double-buffered step."""
    # Two embedding blocks (lane-padded to 128) + one (TB, 1) label block (padded to
    # a full 128-lane tile), each double-buffered by the BlockSpec pipeline.
    per_row = 2 * _round_up(dim, 128) * itemsize + 128 * 4
    budget = 8 * 1024 * 1024                      # total input VMEM incl. double buffers
    tb = budget // (2 * per_row)
    tb = max(8, (tb // 8) * 8)                    # sublane multiple of 8
    return batch if tb >= batch else tb           # full-extent block is always legal


def _make_contrastive_loss_kernel(margin: float, eps: float, total_b: int, tile_b: int):
    def kernel(emb1_ref, emb2_ref, label_ref, out_ref):
        i = pl.program_id(0)

        # F.pairwise_distance adds eps to the difference before the norm.
        diff = (emb1_ref[...] - emb2_ref[...]).astype(jnp.float32) + eps
        sq = jnp.sum(diff * diff, axis=-1, keepdims=True)          # (TB, 1) = d^2
        dist = jnp.sqrt(sq)
        hinge = jnp.maximum(margin - dist, 0.0)

        lab = label_ref[...].astype(jnp.float32)                    # (TB, 1)
        # 0.5*label*d^2 + 0.5*(1-label)*relu(margin-d)^2 ; reuse sq for d^2.
        per_example = 0.5 * (lab * sq + (1.0 - lab) * (hinge * hinge))

        # Mask rows of a ragged final tile (use where so padded NaN/Inf never leaks).
        row = lax.broadcasted_iota(jnp.int32, per_example.shape, 0)
        valid = (i * tile_b + row) < total_b
        partial = jnp.sum(jnp.where(valid, per_example, 0.0), keepdims=True)   # (1, 1)

        # Write this tile's partial sum at [0, 0] of its private (8, 128) output
        # block and zeros elsewhere -> wrapper reduction is jnp.sum(out) / B.
        r = lax.broadcasted_iota(jnp.int32, out_ref.shape, 0)
        c = lax.broadcasted_iota(jnp.int32, out_ref.shape, 1)
        blk = jnp.broadcast_to(partial, out_ref.shape)
        out_ref[...] = jnp.where((r == 0) & (c == 0), blk, 0.0)

    return kernel


def contrastive_loss(emb1, emb2, label, margin: float = 1.0, eps: float = 1e-6,
                     batch_tile: int | None = None):
    """emb1, emb2: (B, D); label: (B,) with 1 = no change (similar), 0 = changed."""
    B, D = emb1.shape
    label2d = label.astype(jnp.float32).reshape(B, 1)

    itemsize = jnp.dtype(emb1.dtype).itemsize
    tile_b = batch_tile if batch_tile is not None else _choose_batch_tile(B, D, itemsize)
    num_tiles = pl.cdiv(B, tile_b)

    kernel = _make_contrastive_loss_kernel(float(margin), float(eps), B, tile_b)

    partials = pl.pallas_call(
        kernel,
        out_shape=jax.ShapeDtypeStruct((num_tiles * 8, 128), jnp.float32),
        grid=(num_tiles,),
        in_specs=[
            pl.BlockSpec((tile_b, D), lambda i: (i, 0)),
            pl.BlockSpec((tile_b, D), lambda i: (i, 0)),
            pl.BlockSpec((tile_b, 1), lambda i: (i, 0)),
        ],
        # Each grid step owns an independent (8,128)-conformant output block, so the
        # batch axis can be sharded across TensorCores on v7x.
        out_specs=pl.BlockSpec((8, 128), lambda i: (i, 0)),
        compiler_params=pltpu.CompilerParams(
            dimension_semantics=("parallel",),
        ),
    )(emb1, emb2, label2d)

    # Tiny cross-tile reduction + mean over the true batch size in the wrapper.
    return jnp.sum(partials) / B


def _reference_loss(emb1, emb2, label, margin=1.0, eps=1e-6):
    # Pure-JAX reference mirroring the PyTorch forward.
    e1 = emb1.astype(jnp.float32)
    e2 = emb2.astype(jnp.float32)
    lab = label.astype(jnp.float32)
    dist = jnp.sqrt(jnp.sum((e1 - e2 + eps) ** 2, axis=-1))
    standard = 1.0 - lab
    return jnp.mean(
        0.5 * (1.0 - standard) * dist ** 2
        + 0.5 * standard * jnp.maximum(margin - dist, 0.0) ** 2
    )


if __name__ == "__main__":
    key = jax.random.PRNGKey(0)
    k1, k2, k3, k4, k5, k6 = jax.random.split(key, 6)

    # Small shapes consistent with the module: a batch of embedding pairs.
    B, D = 8, 32
    emb1 = jax.random.normal(k1, (B, D), dtype=jnp.float32)
    emb2 = jax.random.normal(k2, (B, D), dtype=jnp.float32)
    # label = 1 means "no change" (similar pair), 0 means "changed".
    label = jax.random.bernoulli(k3, 0.5, (B,)).astype(jnp.float32)

    loss = contrastive_loss(emb1, emb2, label, margin=1.0)
    loss = jax.block_until_ready(loss)
    ref = _reference_loss(emb1, emb2, label, margin=1.0)
    assert jnp.allclose(loss, ref, rtol=1e-5, atol=1e-5), (loss, ref)

    # Second check exercising the tiled path (multiple grid steps + ragged final tile).
    B2, D2 = 20, 32
    e1b = jax.random.normal(k4, (B2, D2), dtype=jnp.float32)
    e2b = jax.random.normal(k5, (B2, D2), dtype=jnp.float32)
    labb = jax.random.bernoulli(k6, 0.5, (B2,)).astype(jnp.float32)

    loss2 = contrastive_loss(e1b, e2b, labb, margin=1.0, batch_tile=8)
    loss2 = jax.block_until_ready(loss2)
    ref2 = _reference_loss(e1b, e2b, labb, margin=1.0)
    assert jnp.allclose(loss2, ref2, rtol=1e-5, atol=1e-5), (loss2, ref2)

    print("KERNEL_OK")
</pallas_src>

<mosaic_0001>
module attributes {stable_mosaic.version = 11 : i64} {
  func.func @kernel(%arg0: i32, %arg1: memref<8x32xf32, #tpu.memory_space<vmem>>, %arg2: memref<8x32xf32, #tpu.memory_space<vmem>>, %arg3: memref<8x1xf32, #tpu.memory_space<vmem>>, %arg4: memref<8x128xf32, #tpu.memory_space<vmem>>) attributes {dimension_semantics = [#tpu.dimension_semantics<parallel>], iteration_bounds = array<i64: 1>, scalar_prefetch = 0 : i64, scratch_operands = 0 : i64, tpu.core_type = #tpu.core_type<tc>, window_params = [{transform_indices = @transform_0, window_bounds = array<i64: 8, 32>}, {transform_indices = @transform_1, window_bounds = array<i64: 8, 32>}, {transform_indices = @transform_2, window_bounds = array<i64: 8, 1>}, {transform_indices = @transform_3, window_bounds = array<i64: 8, 128>}]} {
    %c0 = arith.constant 0 : index
    %c0_0 = arith.constant 0 : index
    %0 = vector.load %arg1[%c0, %c0_0] : memref<8x32xf32, #tpu.memory_space<vmem>>, vector<8x32xf32>
    %c0_1 = arith.constant 0 : index
    %c0_2 = arith.constant 0 : index
    %1 = vector.load %arg2[%c0_1, %c0_2] : memref<8x32xf32, #tpu.memory_space<vmem>>, vector<8x32xf32>
    %2 = arith.subf %0, %1 : vector<8x32xf32>
    %cst = arith.constant 9.99999997E-7 : f32
    %3 = vector.broadcast %cst : f32 to vector<8x32xf32>
    %4 = arith.addf %2, %3 : vector<8x32xf32>
    %5 = arith.mulf %4, %4 : vector<8x32xf32>
    %cst_3 = arith.constant dense<0.000000e+00> : vector<8xf32>
    %6 = vector.multi_reduction <add>, %5, %cst_3 [1] : vector<8x32xf32> to vector<8xf32>
    %7 = vector.shape_cast %6 : vector<8xf32> to vector<8x1xf32>
    %8 = math.sqrt %7 : vector<8x1xf32>
    %cst_4 = arith.constant 1.000000e+00 : f32
    %9 = vector.broadcast %cst_4 : f32 to vector<8x1xf32>
    %10 = arith.subf %9, %8 : vector<8x1xf32>
    %cst_5 = arith.constant 0.000000e+00 : f32
    %11 = vector.broadcast %cst_5 : f32 to vector<8x1xf32>
    %12 = arith.maximumf %10, %11 : vector<8x1xf32>
    %c0_6 = arith.constant 0 : index
    %c0_7 = arith.constant 0 : index
    %13 = vector.load %arg3[%c0_6, %c0_7] : memref<8x1xf32, #tpu.memory_space<vmem>>, vector<8x1xf32>
    %14 = arith.mulf %13, %7 : vector<8x1xf32>
    %cst_8 = arith.constant 1.000000e+00 : f32
    %15 = vector.broadcast %cst_8 : f32 to vector<8x1xf32>
    %16 = arith.subf %15, %13 : vector<8x1xf32>
    %17 = arith.mulf %12, %12 : vector<8x1xf32>
    %18 = arith.mulf %16, %17 : vector<8x1xf32>
    %19 = arith.addf %14, %18 : vector<8x1xf32>
    %cst_9 = arith.constant 5.000000e-01 : f32
    %20 = vector.broadcast %cst_9 : f32 to vector<8x1xf32>
    %21 = arith.mulf %20, %19 : vector<8x1xf32>
    %22 = tpu.iota {dimensions = array<i32: 0>} : vector<8x1xi32>
    %c8_i32 = arith.constant 8 : i32
    %23 = arith.muli %arg0, %c8_i32 : i32
    %24 = vector.broadcast %23 : i32 to vector<8x1xi32>
    %25 = arith.addi %24, %22 : vector<8x1xi32>
    %c8_i32_10 = arith.constant 8 : i32
    %26 = vector.broadcast %c8_i32_10 : i32 to vector<8x1xi32>
    %27 = arith.cmpi slt, %25, %26 : vector<8x1xi32>
    %cst_11 = arith.constant 0.000000e+00 : f32
    %28 = vector.broadcast %cst_11 : f32 to vector<8x1xf32>
    %29 = arith.select %27, %21, %28 : vector<8x1xi1>, vector<8x1xf32>
    %30 = vector.shape_cast %29 : vector<8x1xf32> to vector<1x8x1xf32>
    %cst_12 = arith.constant dense<0.000000e+00> : vector<1xf32>
    %31 = vector.multi_reduction <add>, %30, %cst_12 [1, 2] : vector<1x8x1xf32> to vector<1xf32>
    %32 = vector.shape_cast %31 : vector<1xf32> to vector<1x1x1xf32>
    %33 = vector.extract %32[0, 0, 0] : f32 from vector<1x1x1xf32>
    %34 = vector.broadcast %33 : f32 to vector<1x1xf32>
    %35 = tpu.iota {dimensions = array<i32: 0>} : vector<8x128xi32>
    %36 = tpu.iota {dimensions = array<i32: 1>} : vector<8x128xi32>
    %37 = vector.shape_cast %34 : vector<1x1xf32> to vector<1x1xf32>
    %38 = vector.broadcast %37 : vector<1x1xf32> to vector<8x128xf32>
    %c0_i32 = arith.constant 0 : i32
    %39 = vector.broadcast %c0_i32 : i32 to vector<8x128xi32>
    %40 = arith.cmpi eq, %35, %39 : vector<8x128xi32>
    %c0_i32_13 = arith.constant 0 : i32
    %41 = vector.broadcast %c0_i32_13 : i32 to vector<8x128xi32>
    %42 = arith.cmpi eq, %36, %41 : vector<8x128xi32>
    %43 = arith.andi %40, %42 : vector<8x128xi1>
    %cst_14 = arith.constant 0.000000e+00 : f32
    %44 = vector.broadcast %cst_14 : f32 to vector<8x128xf32>
    %45 = arith.select %43, %38, %44 : vector<8x128xi1>, vector<8x128xf32>
    %c0_15 = arith.constant 0 : index
    %c0_16 = arith.constant 0 : index
    %46 = vector.load %arg4[%c0_15, %c0_16] : memref<8x128xf32, #tpu.memory_space<vmem>>, vector<8x128xf32>
    tpu.vector_store %arg4[%c0_15, %c0_16], %45 {strides = array<i32>} : memref<8x128xf32, #tpu.memory_space<vmem>>, vector<8x128xf32>,
    return
  }
  func.func @transform_0(%arg0: i32) -> (i32, i32) {
    %c0_i32 = arith.constant 0 : i32
    %c0_i32_0 = arith.constant 0 : i32
    return %arg0, %c0_i32 : i32, i32
  }
  func.func @transform_1(%arg0: i32) -> (i32, i32) {
    %c0_i32 = arith.constant 0 : i32
    %c0_i32_0 = arith.constant 0 : i32
    return %arg0, %c0_i32 : i32, i32
  }
  func.func @transform_2(%arg0: i32) -> (i32, i32) {
    %c0_i32 = arith.constant 0 : i32
    %c0_i32_0 = arith.constant 0 : i32
    return %arg0, %c0_i32 : i32, i32
  }
  func.func @transform_3(%arg0: i32) -> (i32, i32) {
    %c0_i32 = arith.constant 0 : i32
    %c0_i32_0 = arith.constant 0 : i32
    return %arg0, %c0_i32 : i32, i32
  }
}

</mosaic_0001>

<bundles_post_ra>
// kernel: tpu_custom_call.1
= control target key start
LH: loop header
LB: loop body
LE: loop exit
PB: predicated region body
PF: predicated region fallthrough
CT: control target
= control target key end

     0   :  { %8 = vsyncpa [#allocation3], 0  ;;  %s199_s0 = inlined_call_operand.vmem [shape: f32[8,32], index: 0, kind: input, shape index: {}]   ;;  %s200_s1 = inlined_call_operand.hbm [shape: f32[8,32], index: 1, kind: input, shape index: {}]   ;;  %s201_s2 = inlined_call_operand.vmem [shape: f32[8,1], index: 2, kind: input, shape index: {}]   ;;  %s202_s3 = inlined_call_operand.hbm [shape: f32[8,128], index: 3, kind: output, shape index: {}]  }
   0x1   :  { %9 = vsyncpa [#allocation4], 0  ;;  %s147_s12 = smov [#allocation2]   ;;  %s99_s16 = scalar_lea.hbm %s200_s1, 128 }
   0x2   :  { %s18_s13 = sshll.u32 %s147_s12, 4  ;;  %p100_p0 = scmp.ne.s32.totalorder %s200_s1, %s99_s16  ;;  %s19_s13 = int_to_ptr.vmem [resolvable:$true] %s18_s13 }
   0x3   :  { %p103_p1 = scmp.lt.u32.totalorder %s99_s16, %s200_s1 }
   0x5   :  { %p105_p2 = pnand %p103_p1, %p100_p0 }
   0x7   :  { %108 = shalt.err (!%p105_p2)
}
   0x8   :  { %s109_s21 = scalar_lea.vmem %s19_s13, 128  ;;  %p114_p4 = scmp.lt.s32.totalorder %s19_s13, %s19_s13 }
   0x9   :  { %p110_p3 = scmp.ne.s32.totalorder %s19_s13, %s109_s21  ;;  %p115_p5 = scmp.lt.s32.totalorder %s109_s21, %s109_s21 }
   0xb   :  { %p116_p6 = por %p115_p5, %p114_p4 }
   0xd   :  { %p117_p7 = pnand %p116_p6, %p110_p3 }
   0xf   :  { %120 = shalt.err (!%p117_p7)
}
  0x10   :  { %21 = dma.hbm_to_vmem [thread:$0]  %s200_s1, 128, %s19_s13, [#allocation3]  }
  0x11   :  { %143 = dma.done.wait [#allocation3], 128  }
  0x12   :  { %144 = vsyncadd [#allocation3], 4294967168  ;;  %v27_v0 = vld [vmem:[%s199_s0] sm:$0xff]  ;;  %vm32_vm0 = vcmask 261120   ;;  %vm59_vm3 = vcmask 7168   ;;  %v52_v29 = vlaneseq  ;;  %s148_s0 = smov [#allocation5]  }
  0x13   :  { %v28_v1 = vld [vmem:[#allocation2] sm:$0xff] }
  0x14   :  { %v29_v2 = vsub.f32 %v27_v0, %v28_v1  ;;  %v45_v13 = vld [vmem:[%s201_s2] sm:$0xff]  ;;  %v53_v30 = vshrl.u32 %v52_v29, 7  ;;  %v71_v31 = vand.u32 127, %v52_v29  ;;  %s84_s2 = sshll.u32 %s148_s0, 4  ;;  %s85_s2 = int_to_ptr.vmem [resolvable:$true] %s84_s2 }
  0x15   :  { %v47_v15 = vsub.f32 1.0, %v45_v13  ;;  %s121_s28 = scalar_lea.vmem %s85_s2, 128  ;;  %p126_p9 = scmp.lt.s32.totalorder %s85_s2, %s85_s2 }
  0x16   :  { %v30_v3 = vadd.f32 1e-06, %v29_v2  ;;  %vm73_vm4 = vcmp.eq.s32.totalorder %v53_v30, 0  ;;  %vm74_vm5 = vcmp.eq.s32.totalorder %v71_v31, 0  ;;  %p122_p8 = scmp.ne.s32.totalorder %s85_s2, %s121_s28  ;;  %p127_p10 = scmp.lt.s32.totalorder %s121_s28, %s121_s28 }
  0x17   :  { %vm75_vm6 = vmand %vm73_vm4, %vm74_vm5 }
  0x18   :  { %v31_v4 = vmul.f32 %v30_v3, %v30_v3  ;;  %p128_p11 = por %p127_p10, %p126_p9 }
  0x1a   :  { %v33_v5 = vsel %vm32_vm0, %v31_v4, 0.0  ;;  %p129_p12 = pnand %p128_p11, %p122_p8 }
  0x1b   :  { %34 = vadd.xlane.f32.xlu0 %v33_v5 }
  0xa8   :  { %v35_v6 = vpop.xlane.xlu0 %34 }
  0xa9   :  { %97 = vrsqrt.f32 %v35_v6  ;;  %vm38_vm1 = vcmp.eq.f32.partialorder %v35_v6, inf  ;;  %v41_v9 = vand.u32 2147483648, %v35_v6  ;;  %vm40_vm2 = vcmp.eq.f32.partialorder %v35_v6, 0.0 }
  0xaa   :  { %v46_v17 = vmul.f32 %v45_v13, %v35_v6 }
  0xb3   :  { %v98_v7 = vpop.eup %97 }
  0xb4   :  { %v37_v8 = vmul.f32 %v98_v7, %v35_v6 }
  0xb6   :  { %v39_v10 = vsel %vm38_vm1, %v35_v6, %v37_v8 }
  0xb7   :  { %v42_v11 = vsel %vm40_vm2, %v41_v9, %v39_v10 }
  0xb8   :  { %v43_v12 = vsub.f32 1.0, %v42_v11 }
  0xba   :  { %v44_v14 = vmax.f32 %v43_v12, 0.0 }
  0xbc   :  { %v48_v16 = vmul.f32 %v44_v14, %v44_v14 }
  0xbe   :  { %v49_v18 = vmul.f32 %v48_v16, %v47_v15 }
  0xc0   :  { %v50_v19 = vadd.f32 %v49_v18, %v46_v17 }
  0xc2   :  { %v51_v20 = vmul.f32 0.5, %v50_v19 }
  0xc4   :  { %v60_v21 = vsel %vm59_vm3, %v51_v20, 0.0 }
  0xc5   :  { %61 = vadd.xlane.f32.xlu0 %v60_v21 }
 0x152   :  { %v62_v22 = vpop.xlane.xlu0 %61 }
 0x153   :  { %v63_v23 = vrot.slane %v62_v22, 4 }
 0x155   :  { %v64_v24 = vadd.f32 %v63_v23, %v62_v22 }
 0x157   :  { %v65_v25 = vrot.slane %v64_v24, 2 }
 0x159   :  { %v66_v26 = vadd.f32 %v65_v25, %v64_v24 }
 0x15b   :  { %v67_v27 = vrot.slane %v66_v26, 1 }
 0x15d   :  { %v68_v28 = vadd.f32 %v67_v27, %v66_v26 }
 0x15f   :  { %93 = vpush %v68_v28 }
 0x190   :  { %s94_s27 = spop %93 }
 0x191   :  { %v72_v32 = vstv %s94_s27 }
 0x192   :  { %v76_v33 = vsel %vm75_vm6, %v72_v32, 0.0 }
 0x193   :  { %77 = vst [vmem:[#allocation5] sm:$0xff] %v76_v33 }
 0x194   :  { %132 = shalt.err (!%p129_p12)
}
 0x195   :  { %s133_s4 = scalar_lea.hbm %s202_s3, 128 }
 0x196   :  { %p134_p13 = scmp.ne.s32.totalorder %s202_s3, %s133_s4  ;;  %p137_p0 = scmp.lt.u32.totalorder %s133_s4, %s202_s3 }
 0x198   :  { %p139_p1 = pnand %p137_p0, %p134_p13 }
 0x19a   :  { %142 = shalt.err (!%p139_p1)
}
 0x19b   :  { %87 = dma.vmem_to_hbm [thread:$0]  %s85_s2, 128, %s202_s3, [#allocation4]  }
 0x19c   :  { %145 = dma.done.wait [#allocation4], 128  }
 0x19d   :  { %146 = vsyncadd [#allocation4], 4294967168 }
 0x19e   :  { %91 = vsyncpa [#allocation3], 1 }
 0x19f   :  { %92 = vsyncpa [#allocation4], 1 }

</bundles_post_ra>
